<compile_context>
chip_gen: v7x
topology: tpu7x:2x2x1
jax: 0.10.0
libtpu: 0.0.40
codegen_flags: <defaults>
</compile_context>

<pallas_src>
import jax
import jax.numpy as jnp
from jax.experimental import pallas as pl
from jax.experimental.pallas import tpu as pltpu


def _tpu_memory_config():
    """(block_target_bytes, vmem_limit_bytes) sized per TPU generation."""
    try:
        cap = int(pltpu.get_tpu_info().vmem_capacity_bytes)
    except Exception:
        cap = 64 * 1024 * 1024
    if cap >= 100 * 1024 * 1024:          # v5e / v6e: 128 MiB VMEM
        return 4 * 1024 * 1024, 64 * 1024 * 1024
    return 2 * 1024 * 1024, 48 * 1024 * 1024   # v7x: 64 MiB VMEM


def _choose_blocks(C, T, F, dtype, target_bytes):
    """Pick (Cc, tile_t): channel fold + time tile fitting ~target_bytes per block."""
    itemsize = jnp.dtype(dtype).itemsize
    sub = {4: 8, 2: 16, 1: 32}.get(itemsize, 8)   # sublane packing multiple
    # Largest divisor of C whose minimal (Cc, sub, F) block fits the target.
    cc = 1
    for cand in range(1, C + 1):
        if C % cand == 0 and cand * sub * F * itemsize <= target_bytes:
            cc = cand
    # Largest multiple of `sub` keeping (cc, tile_t, F) within target; capped at
    # round_up(T, sub).  Grids use cdiv + in-kernel masking, so tile_t need not
    # divide T (no full-T fallback that could blow VMEM on v7x).
    t_cap = ((T + sub - 1) // sub) * sub
    tile_t = max((target_bytes // (cc * F * itemsize)) // sub * sub, sub)
    tile_t = min(tile_t, t_cap)
    return cc, tile_t


def _fused_single_pass(inputs, seq_len, gamma_f, beta_f, eps, vmem_limit):
    """One batch slab (C, T, F) resident in VMEM: stats + normalize in one HBM read."""
    B, C, T, F = inputs.shape
    gamma_cf = jnp.broadcast_to(gamma_f.reshape(C, 1, 1), (C, 1, F)).astype(jnp.float32)
    beta_cf = jnp.broadcast_to(beta_f.reshape(C, 1, 1), (C, 1, F)).astype(jnp.float32)

    def fused_kernel(seq_len_ref, x_ref, g_ref, bt_ref, out_ref):
        b = pl.program_id(0)
        sl = seq_len_ref[b]
        x = x_ref[0].astype(jnp.float32)                       # (C, T, F)
        t_idx = jax.lax.broadcasted_iota(jnp.int32, (T, 1), 0)
        xm = jnp.where(t_idx < sl, x, 0.0)                     # masked slab
        s1 = jnp.sum(xm, axis=(0, 1), keepdims=True)           # (1, 1, F)
        s2 = jnp.sum(xm * xm, axis=(0, 1), keepdims=True)      # (1, 1, F)
        sl_f = sl.astype(jnp.float32)
        num_bins = sl_f * jnp.float32(F)     # PyTorch: seq_len * feat_dim
        count = sl_f * jnp.float32(C)        # valid elements per feature
        mean = s1 / num_bins
        var = jnp.maximum((s2 - mean * (2.0 * s1 - count * mean)) / num_bins, 0.0)
        inv_std = jax.lax.rsqrt(var + jnp.float32(eps))        # (1, 1, F)
        g = g_ref[...]                                         # (C, 1, F)
        bt = bt_ref[...]
        scale = inv_std * g                                    # (C, 1, F)
        shift = (-mean * inv_std) * g + bt                     # (C, 1, F)
        # invalid rows: xm == 0 -> out = shift, matching normalization of masked_inputs
        out_ref[0] = (xm * scale + shift).astype(out_ref.dtype)

    return pl.pallas_call(
        fused_kernel,
        grid_spec=pltpu.PrefetchScalarGridSpec(
            num_scalar_prefetch=1,
            grid=(B,),
            in_specs=[
                pl.BlockSpec((1, C, T, F), lambda b, sl: (b, 0, 0, 0)),
                pl.BlockSpec((C, 1, F), lambda b, sl: (0, 0, 0)),
                pl.BlockSpec((C, 1, F), lambda b, sl: (0, 0, 0)),
            ],
            out_specs=pl.BlockSpec((1, C, T, F), lambda b, sl: (b, 0, 0, 0)),
        ),
        out_shape=jax.ShapeDtypeStruct((B, C, T, F), inputs.dtype),
        compiler_params=pltpu.CompilerParams(
            dimension_semantics=("parallel",),
            vmem_limit_bytes=vmem_limit),
    )(seq_len, inputs, gamma_cf, beta_cf)


def _two_pass(inputs, seq_len, gamma_f, beta_f, eps, target_bytes, vmem_limit):
    B, C, T, F = inputs.shape
    Cc, tile_t = _choose_blocks(C, T, F, inputs.dtype, target_bytes)
    ncc = C // Cc
    nt = pl.cdiv(T, tile_t)
    grid = (B, ncc, nt)

    def x_map(b, cc, tt, seq_len_ref):
        # Time tiles fully past seq_len[b] clamp onto the last tile holding valid
        # rows: Pallas dedupes the re-DMA (same block index as the previous step)
        # and pl.when skips the compute, so both passes only stream the valid
        # fraction of x from HBM.
        last_valid = jnp.maximum((seq_len_ref[b] + tile_t - 1) // tile_t - 1, 0)
        return (b, cc, jnp.minimum(tt, last_valid), 0)

    # ---------- pass 1: masked per-(batch, feature) statistics -> scale/shift -------
    def stats_kernel(seq_len_ref, x_ref, scale_ref, shift_ref, s1_ref, s2_ref):
        b = pl.program_id(0)
        cc = pl.program_id(1)
        tt = pl.program_id(2)
        sl = seq_len_ref[b]

        @pl.when((cc == 0) & (tt == 0))
        def _init():
            s1_ref[...] = jnp.zeros_like(s1_ref)
            s2_ref[...] = jnp.zeros_like(s2_ref)

        @pl.when(tt * tile_t < sl)              # skip tiles fully past seq_len[b]
        def _accumulate():
            x = x_ref[0].astype(jnp.float32)                   # (Cc, tile_t, F)
            t_idx = (jax.lax.broadcasted_iota(jnp.int32, (tile_t, 1), 0)
                     + tt * tile_t)
            xm = jnp.where(t_idx < sl, x, 0.0)                 # also zeroes padded rows
            s1_ref[...] += jnp.sum(xm, axis=(0, 1), keepdims=True)
            s2_ref[...] += jnp.sum(xm * xm, axis=(0, 1), keepdims=True)

        @pl.when((cc == pl.num_programs(1) - 1) & (tt == pl.num_programs(2) - 1))
        def _finalize():
            sl_f = sl.astype(jnp.float32)
            num_bins = sl_f * jnp.float32(F)    # PyTorch: seq_len * feat_dim
            count = sl_f * jnp.float32(C)       # valid elements per feature
            s1 = s1_ref[...]
            s2 = s2_ref[...]
            mean = s1 / num_bins
            var = jnp.maximum((s2 - mean * (2.0 * s1 - count * mean)) / num_bins, 0.0)
            inv_std = jax.lax.rsqrt(var + jnp.float32(eps))
            scale_ref[...] = inv_std                           # (1, 1, F)
            shift_ref[...] = -mean * inv_std

    scale, shift = pl.pallas_call(
        stats_kernel,
        grid_spec=pltpu.PrefetchScalarGridSpec(
            num_scalar_prefetch=1,
            grid=grid,
            in_specs=[pl.BlockSpec((1, Cc, tile_t, F), x_map)],
            out_specs=[
                pl.BlockSpec((1, 1, F), lambda b, cc, tt, sl: (b, 0, 0)),
                pl.BlockSpec((1, 1, F), lambda b, cc, tt, sl: (b, 0, 0)),
            ],
            scratch_shapes=[pltpu.VMEM((1, 1, F), jnp.float32),
                            pltpu.VMEM((1, 1, F), jnp.float32)],
        ),
        out_shape=[jax.ShapeDtypeStruct((B, 1, F), jnp.float32),
                   jax.ShapeDtypeStruct((B, 1, F), jnp.float32)],
        compiler_params=pltpu.CompilerParams(
            dimension_semantics=("parallel", "arbitrary", "arbitrary"),
            vmem_limit_bytes=vmem_limit),
    )(seq_len, inputs)

    # Fold per-channel affine into per-(b, c, f) scale/shift once (tiny XLA op),
    # so pass 2 does only 2 VPU ops per element.
    scale4 = scale.reshape(B, 1, 1, F)
    shift4 = shift.reshape(B, 1, 1, F)
    g4 = gamma_f.reshape(1, C, 1, 1)
    b4 = beta_f.reshape(1, C, 1, 1)
    fscale = scale4 * g4                                       # (B, C, 1, F) f32
    fshift = shift4 * g4 + b4                                  # (B, C, 1, F) f32

    # ---------- pass 2: normalize (skips the HBM read of fully padded tiles) --------
    def norm_kernel(seq_len_ref, x_ref, fs_ref, fh_ref, out_ref):
        b = pl.program_id(0)
        tt = pl.program_id(2)
        sl = seq_len_ref[b]
        s = fs_ref[0]                                          # (Cc, 1, F)
        sh = fh_ref[0]                                         # (Cc, 1, F)

        @pl.when(tt * tile_t < sl)
        def _valid():
            x = x_ref[0].astype(jnp.float32)                   # (Cc, tile_t, F)
            t_idx = (jax.lax.broadcasted_iota(jnp.int32, (tile_t, 1), 0)
                     + tt * tile_t)
            xm = jnp.where(t_idx < sl, x, 0.0)
            out_ref[0] = (xm * s + sh).astype(out_ref.dtype)

        @pl.when(tt * tile_t >= sl)
        def _padded():   # tile fully past seq_len: never touch x_ref (DMA was deduped)
            out_ref[0] = jnp.broadcast_to(sh, (Cc, tile_t, F)).astype(out_ref.dtype)

    # TODO(synk): optionally pass input_output_aliases={1: 0} here when the caller
    # permits in-place normalization (halves HBM footprint, not streamed bytes).
    out = pl.pallas_call(
        norm_kernel,
        grid_spec=pltpu.PrefetchScalarGridSpec(
            num_scalar_prefetch=1,
            grid=grid,
            in_specs=[
                pl.BlockSpec((1, Cc, tile_t, F), x_map),
                pl.BlockSpec((1, Cc, 1, F), lambda b, cc, tt, sl: (b, cc, 0, 0)),
                pl.BlockSpec((1, Cc, 1, F), lambda b, cc, tt, sl: (b, cc, 0, 0)),
            ],
            out_specs=pl.BlockSpec((1, Cc, tile_t, F),
                                   lambda b, cc, tt, sl: (b, cc, tt, 0)),
        ),
        out_shape=jax.ShapeDtypeStruct((B, C, T, F), inputs.dtype),
        compiler_params=pltpu.CompilerParams(
            dimension_semantics=("parallel", "parallel", "arbitrary"),
            vmem_limit_bytes=vmem_limit),
    )(seq_len, inputs, fscale, fshift)
    return out


def varlen_instance_norm_2d(inputs, seq_len, seq_mask=None, *, gamma=None, beta=None,
                            eps=1e-8, force_two_pass=False, block_target_bytes=None):
    """Forward of VarLenInstanceNorm2d.

    inputs: (B, C, T, F); seq_len: (B,) int; seq_mask: (B, T) bool (accepted for API
    parity, assumed equal to the canonical prefix mask derived from seq_len).
    gamma/beta: optional (C,) affine parameters.  seq_len == 0 yields NaN, matching
    the reference's division by zero.
    """
    # TODO(synk): the kernels rebuild the mask from seq_len (canonical prefix mask);
    # arbitrary seq_mask patterns would need the (B, T) mask streamed in explicitly.
    del seq_mask

    B, C, T, F = inputs.shape
    seq_len = jnp.asarray(seq_len, jnp.int32)

    affine = gamma is not None
    gamma_f = (jnp.asarray(gamma, jnp.float32) if affine
               else jnp.ones((C,), jnp.float32))
    beta_f = (jnp.asarray(beta, jnp.float32) if affine
              else jnp.zeros((C,), jnp.float32))

    target_bytes, vmem_limit = _tpu_memory_config()
    if block_target_bytes is not None:
        target_bytes = int(block_target_bytes)

    itemsize = jnp.dtype(inputs.dtype).itemsize
    slab_io = C * T * F * itemsize            # one batch slab at I/O dtype
    slab_f32 = C * T * F * 4                  # in-kernel f32 temporaries
    fast_ok = (not force_two_pass) and (
        4 * slab_io + 3 * slab_f32 <= (vmem_limit * 3) // 4)

    if fast_ok:
        return _fused_single_pass(inputs, seq_len, gamma_f, beta_f, eps, vmem_limit)
    return _two_pass(inputs, seq_len, gamma_f, beta_f, eps, target_bytes, vmem_limit)


def ref_forward(inputs, seq_len, seq_mask, eps=1e-8, gamma=None, beta=None):
    """Pure-JAX mirror of the PyTorch VarLenInstanceNorm2d.forward."""
    B, C, T, F = inputs.shape
    num_bins = (seq_len.astype(jnp.float32) * F).reshape(B, 1, 1, 1)
    m = seq_mask.astype(inputs.dtype)[:, None, :, None]               # (B,1,T,1)
    masked = inputs * m
    mean = masked.sum(axis=(1, 2), keepdims=True) / num_bins           # (B,1,1,F)
    var = ((masked - mean) ** 2) * m
    var = var.sum(axis=(1, 2), keepdims=True) / num_bins
    normed = (masked - mean) / jnp.sqrt(var + eps)
    if gamma is not None:
        normed = normed * gamma.reshape(1, C, 1, 1) + beta.reshape(1, C, 1, 1)
    return normed


if __name__ == "__main__":
    B, C, T, F = 2, 4, 32, 128            # lane-dense feature dim (multiple of 128)
    key = jax.random.PRNGKey(0)
    kx, kg, kb = jax.random.split(key, 3)
    x = jax.random.normal(kx, (B, C, T, F), dtype=jnp.float32) * 2.0 + 0.5
    seq_len = jnp.array([11, 32], dtype=jnp.int32)
    seq_mask = jnp.arange(T)[None, :] < seq_len[:, None]              # (B, T) bool

    gamma = 1.0 + 0.1 * jax.random.normal(kg, (C,), dtype=jnp.float32)
    beta = 0.1 * jax.random.normal(kb, (C,), dtype=jnp.float32)

    ref = ref_forward(x, seq_len, seq_mask, eps=1e-8)
    ref_a = ref_forward(x, seq_len, seq_mask, eps=1e-8, gamma=gamma, beta=beta)

    # --- single-pass fused path (default dispatch at this size) ---
    out = varlen_instance_norm_2d(x, seq_len, seq_mask, eps=1e-8)
    jax.block_until_ready(out)
    assert out.shape == ref.shape
    assert jnp.allclose(out, ref, atol=1e-3, rtol=1e-4), "fused affine=False mismatch"

    out_a = varlen_instance_norm_2d(x, seq_len, seq_mask, gamma=gamma, beta=beta,
                                    eps=1e-8)
    jax.block_until_ready(out_a)
    assert jnp.allclose(out_a, ref_a, atol=1e-3, rtol=1e-4), "fused affine=True mismatch"

    # --- two-pass tiled path (forced, small blocks: exercises channel folding,
    #     partial time tiles, DMA clamping and the padded-tile skip in pass 2) ---
    small_blocks = 2 * 8 * F * 4          # -> Cc=2, tile_t=8 at these shapes
    out2 = varlen_instance_norm_2d(x, seq_len, seq_mask, eps=1e-8,
                                   force_two_pass=True,
                                   block_target_bytes=small_blocks)
    jax.block_until_ready(out2)
    assert jnp.allclose(out2, ref, atol=1e-3, rtol=1e-4), "two-pass affine=False mismatch"

    out2_a = varlen_instance_norm_2d(x, seq_len, seq_mask, gamma=gamma, beta=beta,
                                     eps=1e-8, force_two_pass=True,
                                     block_target_bytes=small_blocks)
    jax.block_until_ready(out2_a)
    assert jnp.allclose(out2_a, ref_a, atol=1e-3, rtol=1e-4), "two-pass affine=True mismatch"

    print("KERNEL_OK")
</pallas_src>

<mosaic_0001>
module attributes {stable_mosaic.version = 11 : i64} {
  func.func @fused_kernel(%arg0: i32, %arg1: memref<2xi32, #tpu.memory_space<smem>>, %arg2: memref<1x4x32x128xf32, #tpu.memory_space<vmem>>, %arg3: memref<4x1x128xf32, #tpu.memory_space<vmem>>, %arg4: memref<4x1x128xf32, #tpu.memory_space<vmem>>, %arg5: memref<1x4x32x128xf32, #tpu.memory_space<vmem>>) attributes {dimension_semantics = [#tpu.dimension_semantics<parallel>], iteration_bounds = array<i64: 2>, scalar_prefetch = 1 : i64, scratch_operands = 0 : i64, tpu.core_type = #tpu.core_type<tc>, window_params = [{transform_indices = @transform_0, window_bounds = array<i64: 1, 4, 32, 128>}, {pipeline_mode = #tpu.pipeline_mode<synchronous>, transform_indices = @transform_1, window_bounds = array<i64: 4, 1, 128>}, {pipeline_mode = #tpu.pipeline_mode<synchronous>, transform_indices = @transform_2, window_bounds = array<i64: 4, 1, 128>}, {transform_indices = @transform_3, window_bounds = array<i64: 1, 4, 32, 128>}]} {
    %0 = arith.index_cast %arg0 : i32 to index
    %1 = memref.load %arg1[%0] : memref<2xi32, #tpu.memory_space<smem>>
    %c0 = arith.constant 0 : index
    %c0_0 = arith.constant 0 : index
    %c0_1 = arith.constant 0 : index
    %c0_2 = arith.constant 0 : index
    %2 = vector.load %arg2[%c0, %c0_0, %c0_1, %c0_2] : memref<1x4x32x128xf32, #tpu.memory_space<vmem>>, vector<1x4x32x128xf32>
    %3 = vector.shape_cast %2 : vector<1x4x32x128xf32> to vector<4x32x128xf32>
    %4 = tpu.iota {dimensions = array<i32: 0>} : vector<32x1xi32>
    %5 = vector.broadcast %1 : i32 to vector<32x1xi32>
    %6 = arith.cmpi slt, %4, %5 : vector<32x1xi32>
    %cst = arith.constant 0.000000e+00 : f32
    %7 = vector.shape_cast %6 : vector<32x1xi1> to vector<1x32x1xi1>
    %8 = vector.broadcast %7 : vector<1x32x1xi1> to vector<4x32x128xi1>
    %9 = vector.broadcast %cst : f32 to vector<4x32x128xf32>
    %10 = arith.select %8, %3, %9 : vector<4x32x128xi1>, vector<4x32x128xf32>
    %cst_3 = arith.constant dense<0.000000e+00> : vector<128xf32>
    %11 = vector.multi_reduction <add>, %10, %cst_3 [0, 1] : vector<4x32x128xf32> to vector<128xf32>
    %12 = vector.shape_cast %11 : vector<128xf32> to vector<1x1x128xf32>
    %13 = arith.mulf %10, %10 : vector<4x32x128xf32>
    %cst_4 = arith.constant dense<0.000000e+00> : vector<128xf32>
    %14 = vector.multi_reduction <add>, %13, %cst_4 [0, 1] : vector<4x32x128xf32> to vector<128xf32>
    %15 = vector.shape_cast %14 : vector<128xf32> to vector<1x1x128xf32>
    %16 = arith.sitofp %1 : i32 to f32
    %cst_5 = arith.constant 1.280000e+02 : f32
    %17 = arith.mulf %16, %cst_5 : f32
    %cst_6 = arith.constant 4.000000e+00 : f32
    %18 = arith.mulf %16, %cst_6 : f32
    %19 = vector.broadcast %17 : f32 to vector<1x1x128xf32>
    %20 = arith.divf %12, %19 : vector<1x1x128xf32>
    %cst_7 = arith.constant 2.000000e+00 : f32
    %21 = vector.broadcast %cst_7 : f32 to vector<1x1x128xf32>
    %22 = arith.mulf %21, %12 : vector<1x1x128xf32>
    %23 = vector.broadcast %18 : f32 to vector<1x1x128xf32>
    %24 = arith.mulf %23, %20 : vector<1x1x128xf32>
    %25 = arith.subf %22, %24 : vector<1x1x128xf32>
    %26 = arith.mulf %20, %25 : vector<1x1x128xf32>
    %27 = arith.subf %15, %26 : vector<1x1x128xf32>
    %28 = vector.broadcast %17 : f32 to vector<1x1x128xf32>
    %29 = arith.divf %27, %28 : vector<1x1x128xf32>
    %cst_8 = arith.constant 0.000000e+00 : f32
    %30 = vector.broadcast %cst_8 : f32 to vector<1x1x128xf32>
    %31 = arith.maximumf %29, %30 : vector<1x1x128xf32>
    %cst_9 = arith.constant 9.99999993E-9 : f32
    %32 = vector.broadcast %cst_9 : f32 to vector<1x1x128xf32>
    %33 = arith.addf %31, %32 : vector<1x1x128xf32>
    %34 = math.rsqrt %33 : vector<1x1x128xf32>
    %c0_10 = arith.constant 0 : index
    %c0_11 = arith.constant 0 : index
    %c0_12 = arith.constant 0 : index
    %35 = vector.load %arg3[%c0_10, %c0_11, %c0_12] : memref<4x1x128xf32, #tpu.memory_space<vmem>>, vector<4x1x128xf32>
    %c0_13 = arith.constant 0 : index
    %c0_14 = arith.constant 0 : index
    %c0_15 = arith.constant 0 : index
    %36 = vector.load %arg4[%c0_13, %c0_14, %c0_15] : memref<4x1x128xf32, #tpu.memory_space<vmem>>, vector<4x1x128xf32>
    %37 = vector.broadcast %34 : vector<1x1x128xf32> to vector<4x1x128xf32>
    %38 = arith.mulf %37, %35 : vector<4x1x128xf32>
    %cst_16 = arith.constant 0.000000e+00 : f32
    %39 = vector.broadcast %cst_16 : f32 to vector<1x1x128xf32>
    %40 = arith.subf %39, %20 : vector<1x1x128xf32>
    %41 = arith.mulf %40, %34 : vector<1x1x128xf32>
    %42 = vector.broadcast %41 : vector<1x1x128xf32> to vector<4x1x128xf32>
    %43 = arith.mulf %42, %35 : vector<4x1x128xf32>
    %44 = arith.addf %43, %36 : vector<4x1x128xf32>
    %45 = vector.broadcast %38 : vector<4x1x128xf32> to vector<4x32x128xf32>
    %46 = arith.mulf %10, %45 : vector<4x32x128xf32>
    %47 = vector.broadcast %44 : vector<4x1x128xf32> to vector<4x32x128xf32>
    %48 = arith.addf %46, %47 : vector<4x32x128xf32>
    %c0_17 = arith.constant 0 : index
    %c0_18 = arith.constant 0 : index
    %c0_19 = arith.constant 0 : index
    %c0_20 = arith.constant 0 : index
    %49 = vector.load %arg5[%c0_17, %c0_18, %c0_19, %c0_20] : memref<1x4x32x128xf32, #tpu.memory_space<vmem>>, vector<1x4x32x128xf32>
    %50 = vector.shape_cast %49 : vector<1x4x32x128xf32> to vector<4x32x128xf32>
    %51 = vector.shape_cast %48 : vector<4x32x128xf32> to vector<1x4x32x128xf32>
    tpu.vector_store %arg5[%c0_17, %c0_18, %c0_19, %c0_20], %51 {strides = array<i32>} : memref<1x4x32x128xf32, #tpu.memory_space<vmem>>, vector<1x4x32x128xf32>,
    return
  }
  func.func @transform_0(%arg0: i32, %arg1: memref<2xi32, #tpu.memory_space<smem>>) -> (i32, i32, i32, i32) {
    %c0_i32 = arith.constant 0 : i32
    %c0_i32_0 = arith.constant 0 : i32
    %c0_i32_1 = arith.constant 0 : i32
    %c0_i32_2 = arith.constant 0 : i32
    return %arg0, %c0_i32, %c0_i32_0, %c0_i32_1 : i32, i32, i32, i32
  }
  func.func @transform_1(%arg0: i32, %arg1: memref<2xi32, #tpu.memory_space<smem>>) -> (i32, i32, i32) {
    %c0_i32 = arith.constant 0 : i32
    %c0_i32_0 = arith.constant 0 : i32
    %c0_i32_1 = arith.constant 0 : i32
    %c0_i32_2 = arith.constant 0 : i32
    return %c0_i32, %c0_i32_0, %c0_i32_1 : i32, i32, i32
  }
  func.func @transform_2(%arg0: i32, %arg1: memref<2xi32, #tpu.memory_space<smem>>) -> (i32, i32, i32) {
    %c0_i32 = arith.constant 0 : i32
    %c0_i32_0 = arith.constant 0 : i32
    %c0_i32_1 = arith.constant 0 : i32
    %c0_i32_2 = arith.constant 0 : i32
    return %c0_i32, %c0_i32_0, %c0_i32_1 : i32, i32, i32
  }
  func.func @transform_3(%arg0: i32, %arg1: memref<2xi32, #tpu.memory_space<smem>>) -> (i32, i32, i32, i32) {
    %c0_i32 = arith.constant 0 : i32
    %c0_i32_0 = arith.constant 0 : i32
    %c0_i32_1 = arith.constant 0 : i32
    %c0_i32_2 = arith.constant 0 : i32
    return %arg0, %c0_i32, %c0_i32_0, %c0_i32_1 : i32, i32, i32, i32
  }
}

</mosaic_0001>

<bundles_post_ra>
// kernel: tpu_custom_call.1
= control target key start
LH: loop header
LB: loop body
LE: loop exit
PB: predicated region body
PF: predicated region fallthrough
CT: control target
= control target key end

     0   :  { %s1145_s0 = inlined_call_operand.hbm [shape: s32[2], index: 0, kind: input, shape index: {}]   ;;  %s1146_s1 = inlined_call_operand.hbm [shape: f32[2,4,32,128], index: 1, kind: input, shape index: {}]   ;;  %s1147_s2 = inlined_call_operand.vmem [shape: f32[4,1,128], index: 2, kind: input, shape index: {}]   ;;  %s1148_s3 = inlined_call_operand.vmem [shape: f32[4,1,128], index: 3, kind: input, shape index: {}]   ;;  %s1149_s4 = inlined_call_operand.hbm [shape: f32[2,4,32,128], index: 4, kind: output, shape index: {}]  }
   0x1   :  { %s579_s17 = scalar_lea.hbm %s1145_s0, 16 }
   0x2   :  { %p580_p0 = scmp.ne.s32.totalorder %s1145_s0, %s579_s17  ;;  %p583_p1 = scmp.lt.u32.totalorder %s579_s17, %s1145_s0 }
   0x4   :  { %p585_p2 = pnand %p583_p1, %p580_p0 }
   0x6   :  { %588 = shalt.err (!%p585_p2)  }
   0x7   :  { %s689_s22 = smov [#allocation3]  }
   0x8   :  { %10 = dma.hbm_to_smem %s1145_s0, 16, %s689_s22, [#allocation2] }
   0x9   :  { %663 = dma.done.wait [#allocation2], 16 }
   0xa   :  { %664 = vsyncadd [#allocation2], 4294967280 }
   0xb   :  { %12 = sfence }
   0xc   :  { %13 = vsyncpa [#allocation5], 0 }
   0xd   :  { %15 = vsyncpa [#allocation5 + $0x1], 0 }
   0xe   :  { %16 = vsyncpa [#allocation6], 0 }
   0xf   :  { %18 = vsyncpa [#allocation6 + $0x1], 0  ;;  %s733_s25 = smov 0   ;;  %s735_s26 = smov 0  }
  0x10   :  { %s737_s27 = smov 0   ;;  %s739_s28 = smov 0  }
  0x11 LB: > { %s754_s0 = sadd.s32 4294967295, %s687_s28   ;;  %s508_s29 = sadd.s32 4294967294, %s687_s28   ;;  %s687_s28 = sphi %s739_s28, %s1162_s28   ;;  %s683_s27 = sphi %s737_s27, %s1161_s27   ;;  %s679_s26 = sphi %s735_s26, %s1160_s26   ;;  %s675_s25 = sphi %s733_s25, %s1159_s25  }
  0x12   : > { %s758_s30 = sadd.s32 1, %s687_s28   ;;  %s31_s5 = sadd.s32 1, %s683_s27 }
  0x13   : > { %s28_s6 = ssub.s32 %s687_s28, %s758_s30  ;;  %p38_p3 = scmp.ne.s32.totalorder %s683_s27, %s679_s26 }
  0x14   : > { %p29_p4 = scmp.eq.s32.totalorder %s28_s6, 0  ;;  %p39_p5 = scmp.eq.s32.totalorder %s687_s28, 0 }
  0x15   : > { %p44_p6 = scmp.ne.s32.totalorder %s679_s26, %s675_s25  ;;  %p45_p7 = scmp.eq.s32.totalorder %s754_s0, 0 }
  0x16   : > { %s770_s7 = scalar_select %p29_p4, %s683_s27, %s31_s5  }
  0x17   : > { %p772_p8 = por %p39_p5, %p38_p3  ;;  %p776_p9 = por %p45_p7, %p44_p6 }
  0x18   : > { %p110_p10 = scmp.eq.s32.totalorder %s754_s0, 1  ;;  %p116_p11 = scmp.eq.s32.totalorder %s508_s29, 1 }
  0x19   : > { %p536_p13 = scmp.lt.s32.totalorder %s687_s28, 2  ;;  %s142_s12 = sand.u32 1, %s683_s27  }
  0x1a   : > { %p783_p0 = por %p110_p10, %p38_p3  ;;  %p787_p1 = por %p116_p11, %p44_p6 }
  0x1b   : > { %s522_s13 = sshll.u32 %s687_s28, 11  ;;  %s511_s14 = sshll.u32 %s142_s12, 7 }
  0x1c   : > { %s1153_s10 = scalar_select %p783_p0, 1, 0 }
  0x1d   : > { %s1154_s11 = scalar_select %p787_p1, 1, 0 }
  0x1e   : > { %s796_s17 = scalar_lea.hbm %s1146_s1, %s522_s13  ;;  %s146_s18 = scalar_lea.vmem [#allocation4], %s511_s14 }
  0x1f   : > { %s153_s19 = sshll.u32 %s146_s18, 4  ;;  %p800_p2 = pnand %p536_p13, %p772_p8  ;;  %s804_s19 = int_to_ptr.vmem [resolvable:$true] %s153_s19 }
  0x20   : > { %s806_s21 = scalar_lea.sflag [#allocation5], %s142_s12  ;;  %s589_s22 = scalar_lea.hbm %s796_s17, 2048 }
  0x21   : > { %p590_p3 = scmp.ne.s32.totalorder %s796_s17, %s589_s22  ;;  %p591_p4 = pneg %p800_p2 }
  0x22   : > { %s594_s29 = scalar_lea.hbm %s1146_s1, 4096  ;;  %p595_p7 = scmp.lt.u32.totalorder %s796_s17, %s1146_s1 }
  0x23   : > { %p592_p5 = pnand %p591_p4, %p590_p3  ;;  %p596_p8 = scmp.lt.u32.totalorder %s594_s29, %s589_s22 }
  0x24   : > { %p598_p11 = scmp.lt.u32.totalorder %s589_s22, %s796_s17 }
  0x25   : > { %p593_p6 = pneg %p592_p5  ;;  %p597_p10 = por %p596_p8, %p595_p7 }
  0x27   : > { %p599_p13 = por %p598_p11, %p597_p10 }
  0x29   : > { %p600_p12 = pnand %p599_p13, %p593_p6 }
  0x2b   : > { %603 = shalt.err (!%p600_p12)
}
  0x2c   : > { %s604_s8 = scalar_lea.vmem %s804_s19, 2048  ;;  %s690_s12 = smov [#allocation4]  }
  0x2d   : > { %p605_p3 = scmp.ne.s32.totalorder %s804_s19, %s604_s8  ;;  %s609_s13 = sshll.u32 %s690_s12, 4  ;;  %s610_s13 = int_to_ptr.vmem [resolvable:$false] %s609_s13 }
  0x2e   : > { %s611_s14 = scalar_lea.vmem %s610_s13, 4096  ;;  %p612_p0 = scmp.lt.s32.totalorder %s804_s19, %s610_s13 }
  0x2f   : > { %p607_p5 = pnand %p605_p3, %p591_p4  ;;  %p613_p7 = scmp.lt.s32.totalorder %s611_s14, %s604_s8 }
  0x31   : > { %p608_p1 = pneg %p607_p5  ;;  %p614_p8 = por %p613_p7, %p612_p0 }
  0x33   : > { %p615_p10 = pnand %p614_p8, %p608_p1 }
  0x35   : > { %618 = shalt.err (!%p615_p10)
}
  0x36   : > { %s691_s15 = smov 128   ;;  %s692_s16 = smov 8  }
  0x37   : > { %531 = dma.hbm_to_vmem [thread:$0]  (!%p800_p2), %s796_s17, 2048, %s804_s19, %s806_s21, %s691_s15, %s691_s15, %s692_s16  }
  0x38   : > { %p514_p12 = scmp.ge.s32.totalorder %s687_s28, 1  ;;  %p161_p4 = scmp.lt.s32.totalorder %s687_s28, 3 }
  0x3a   : > { %p162_p6 = pnand %p514_p12, %p161_p4 }
  0x3b   : > { %s837_s18 = sand.u32 (!%p162_p6), 1, %s679_s26  }
  0x3c   : > { %165 = sbr.rel (%p162_p6) target bundleno = 179 (0xb3), region = 32  ;;  %s515_s22 = sshll.u32 (!%p162_p6), %s837_s18, 7 }
  0x3d   : > { %s168_s23 = scalar_lea.sflag (!%p162_p6), [#allocation5], %s837_s18  ;;  %s843_s24 = scalar_lea.vmem (!%p162_p6), [#allocation4], %s515_s22 }
  0x43   : > { %666 = dma.done.wait (%p776_p9), %s168_s23, 2048  }
  0x44   : > { %668 = vsyncadd (%p776_p9), %s168_s23, 4294965248  ;;  %v211_v0 = vlaneseq  ;;  %s850_s17 = sld [smem:[#allocation3 + %s754_s0]]  ;;  %v195_v5 = vld [vmem:[%s843_s24] sm:$0xff]  ;;  %v196_v6 = vld [vmem:[%s843_s24 + $0x8] sm:$0xff]  ;;  %s1069_s21 = scalar_lea.vmem [#allocation7], %s515_s22 }
  0x45   : > { %v197_v7 = vld [vmem:[%s843_s24 + $0x10] sm:$0xff]  ;;  %v198_v9 = vld [vmem:[%s843_s24 + $0x18] sm:$0xff]  ;;  %v199_v14 = vld [vmem:[%s843_s24 + $0x20] sm:$0xff]  ;;  %s523_s22 = sshll.u32 %s754_s0, 11  ;;  %s435_s29 = sshll.u32 %s1069_s21, 4  ;;  %s1097_s29 = int_to_ptr.vmem [resolvable:$true] %s435_s29 }
  0x46   : > { %v852_v1 = vshrl.u32 %v211_v0, 7  ;;  %v200_v16 = vld [vmem:[%s843_s24 + $0x28] sm:$0xff]  ;;  %v201_v21 = vld [vmem:[%s843_s24 + $0x30] sm:$0xff]  ;;  %v202_v25 = vld [vmem:[%s843_s24 + $0x38] sm:$0xff]  ;;  %s1095_s0 = scalar_lea.hbm %s1149_s4, %s523_s22  ;;  %s422_s8 = scalar_lea.sflag [#allocation6], %s837_s18 }
  0x47   : > { %v203_v30 = vld [vmem:[%s843_s24 + $0x40] sm:$0xff]  ;;  %v204_v35 = vld [vmem:[%s843_s24 + $0x48] sm:$0xff]  ;;  %v205_v40 = vld [vmem:[%s843_s24 + $0x50] sm:$0xff]  ;;  %s619_s12 = scalar_lea.vmem %s1097_s29, 2048  ;;  %p1156_p0 = scmp.ne.s32.totalorder %s1153_s10, 0 }
  0x48   : > { %v855_v2 = vadd.s32 8, %v852_v1  ;;  %v858_v3 = vadd.s32 16, %v852_v1  ;;  %v861_v4 = vadd.s32 24, %v852_v1  ;;  %v206_v45 = vld [vmem:[%s843_s24 + $0x58] sm:$0xff]  ;;  %v207_v50 = vld [vmem:[%s843_s24 + $0x60] sm:$0xff]  ;;  %v208_v55 = vld [vmem:[%s843_s24 + $0x68] sm:$0xff]  ;;  %p620_p9 = scmp.ne.s32.totalorder %s1097_s29, %s619_s12 }
  0x49   : > { %v209_v60 = vld [vmem:[%s843_s24 + $0x70] sm:$0xff]  ;;  %s693_s13 = smov [#allocation7]  }
  0x4a   : > { %v867_v8 = vstv %s850_s17  ;;  %s303_s9 = scvt.s32.f32 %s850_s17  ;;  %p621_p1 = pnand %p620_p9, %p1156_p0 }
  0x4b   : > { %vm217_vm0 = vcmp.lt.s32.totalorder %v852_v1, %v867_v8  ;;  %vm218_vm1 = vcmp.lt.s32.totalorder %v855_v2, %v867_v8  ;;  %vm219_vm2 = vcmp.lt.s32.totalorder %v858_v3, %v867_v8  ;;  %vm220_vm3 = vcmp.lt.s32.totalorder %v861_v4, %v867_v8  ;;  %s623_s14 = sshll.u32 %s693_s13, 4  ;;  %s624_s14 = int_to_ptr.vmem [resolvable:$false] %s623_s14 }
  0x4c   : > { %v881_v10 = vsel %vm217_vm0, %v195_v5, 0.0  ;;  %v886_v11 = vsel %vm218_vm1, %v196_v6, 0.0  ;;  %v891_v12 = vsel %vm219_vm2, %v197_v7, 0.0  ;;  %v899_v15 = vsel %vm220_vm3, %v198_v9, 0.0  ;;  %v210_v5 = vld [vmem:[%s843_s24 + $0x78] sm:$0xff]  ;;  %s304_s19 = smul.f32 128.0, %s303_s9  ;;  %p622_p2 = pneg %p621_p1 }
  0x4d   : > { %v245_v13 = vadd.f32 %v886_v11, %v881_v10  ;;  %v906_v18 = vsel %vm217_vm0, %v199_v14, 0.0  ;;  %v266_v19 = vmul.f32 %v881_v10, %v881_v10  ;;  %v267_v20 = vmul.f32 %v886_v11, %v886_v11  ;;  %s305_s20 = smul.f32 4.0, %s303_s9  ;;  %s625_s15 = scalar_lea.vmem %s624_s14, 4096 }
  0x4e   : > { %v917_v23 = vsel %vm218_vm1, %v200_v16, 0.0  ;;  %v268_v24 = vmul.f32 %v891_v12, %v891_v12  ;;  %v926_v27 = vsel %vm219_vm2, %v201_v21, 0.0  ;;  %v269_v28 = vmul.f32 %v899_v15, %v899_v15  ;;  %p626_p11 = scmp.lt.s32.totalorder %s1097_s29, %s624_s14  ;;  %p627_p13 = scmp.lt.s32.totalorder %s625_s15, %s619_s12 }
  0x4f   : > { %v246_v17 = vadd.f32 %v245_v13, %v891_v12  ;;  %v282_v29 = vadd.f32 %v267_v20, %v266_v19  ;;  %v935_v32 = vsel %vm220_vm3, %v202_v25, 0.0  ;;  %v270_v33 = vmul.f32 %v906_v18, %v906_v18 }
  0x50   : > { %v944_v37 = vsel %vm217_vm0, %v203_v30, 0.0  ;;  %v271_v38 = vmul.f32 %v917_v23, %v917_v23  ;;  %v953_v42 = vsel %vm218_vm1, %v204_v35, 0.0  ;;  %v272_v43 = vmul.f32 %v926_v27, %v926_v27  ;;  %p628_p3 = por %p627_p13, %p626_p11 }
  0x51   : > { %v247_v22 = vadd.f32 %v246_v17, %v899_v15  ;;  %v283_v34 = vadd.f32 %v282_v29, %v268_v24  ;;  %v962_v47 = vsel %vm219_vm2, %v205_v40, 0.0  ;;  %v273_v48 = vmul.f32 %v935_v32, %v935_v32 }
  0x52   : > { %v971_v52 = vsel %vm220_vm3, %v206_v45, 0.0  ;;  %v274_v53 = vmul.f32 %v944_v37, %v944_v37  ;;  %v981_v57 = vsel %vm217_vm0, %v207_v50, 0.0  ;;  %v275_v58 = vmul.f32 %v953_v42, %v953_v42  ;;  %p629_p5 = pnand %p628_p3, %p622_p2 }
  0x53   : > { %v248_v26 = vadd.f32 %v247_v22, %v906_v18  ;;  %v284_v39 = vadd.f32 %v283_v34, %v269_v28  ;;  %v990_v62 = vsel %vm218_vm1, %v208_v55, 0.0  ;;  %v276_v63 = vmul.f32 %v962_v47, %v962_v47 }
  0x54   : > { %v1001_v7 = vsel %vm219_vm2, %v209_v60, 0.0  ;;  %v277_v9 = vmul.f32 %v971_v52, %v971_v52  ;;  %v1009_v14 = vsel %vm220_vm3, %v210_v5, 0.0  ;;  %v278_v16 = vmul.f32 %v981_v57, %v981_v57  ;;  %v320_v60 = vld [vmem:[%s1147_s2 + $0x1] sm:$0x1] }
  0x55   : > { %v249_v31 = vadd.f32 %v248_v26, %v917_v23  ;;  %v285_v44 = vadd.f32 %v284_v39, %v270_v33  ;;  %v306_v3 = vstv %s304_s19  ;;  %v279_v20 = vmul.f32 %v990_v62, %v990_v62 }
  0x56   : > { %v280_v24 = vmul.f32 %v1001_v7, %v1001_v7  ;;  %575 = vrcp.f32 %v306_v3  ;;  %v281_v25 = vmul.f32 %v1009_v14, %v1009_v14 }
  0x57   : > { %v250_v36 = vadd.f32 %v249_v31, %v926_v27  ;;  %v286_v49 = vadd.f32 %v285_v44, %v271_v38 }
  0x59   : > { %v251_v41 = vadd.f32 %v250_v36, %v935_v32  ;;  %v287_v54 = vadd.f32 %v286_v49, %v272_v43 }
  0x5b   : > { %v252_v46 = vadd.f32 %v251_v41, %v944_v37  ;;  %v288_v59 = vadd.f32 %v287_v54, %v273_v48  ;;  %v310_v41 = vstv %s305_s20 }
  0x5d   : > { %v253_v51 = vadd.f32 %v252_v46, %v953_v42  ;;  %v289_v0 = vadd.f32 %v288_v59, %v274_v53  ;;  %v319_v59 = vld [vmem:[%s1147_s2] sm:$0x1] }
  0x5f   : > { %v254_v56 = vadd.f32 %v253_v51, %v962_v47  ;;  %v290_v2 = vadd.f32 %v289_v0, %v275_v58  ;;  %v322_v0 = vld [vmem:[%s1147_s2 + $0x3] sm:$0x1] }
  0x60   : > { %v576_v36 = vpop.eup %575 }
  0x61   : > { %v255_v61 = vadd.f32 %v254_v56, %v971_v52  ;;  %v291_v17 = vadd.f32 %v290_v2, %v276_v63  ;;  %v1033_v63 = vsub.s32 0, %v852_v1  ;;  %v324_v1 = vld [vmem:[%s1148_s3 + $0x1] sm:$0x1] }
  0x63   : > { %v256_v6 = vadd.f32 %v255_v61, %v981_v57  ;;  %v292_v21 = vadd.f32 %v291_v17, %v277_v9  ;;  %v321_v61 = vld [vmem:[%s1147_s2 + $0x2] sm:$0x1] }
  0x65   : > { %v257_v13 = vadd.f32 %v256_v6, %v990_v62  ;;  %v293_v4 = vadd.f32 %v292_v21, %v278_v16  ;;  %v323_v16 = vld [vmem:[%s1148_s3] sm:$0x1] }
  0x67   : > { %v258_v19 = vadd.f32 %v257_v13, %v1001_v7  ;;  %v294_v26 = vadd.f32 %v293_v4, %v279_v20 }
  0x69   : > { %v259_v22 = vadd.f32 %v258_v19, %v1009_v14  ;;  %v295_v29 = vadd.f32 %v294_v26, %v280_v24 }
  0x6b   : > { %v260_v8 = vrot.slane %v259_v22, 4  ;;  %v296_v31 = vadd.f32 %v295_v29, %v281_v25 }
  0x6d   : > { %v261_v28 = vadd.f32 %v260_v8, %v259_v22  ;;  %v297_v34 = vrot.slane %v296_v31, 4  ;;  %v325_v22 = vld [vmem:[%s1148_s3 + $0x2] sm:$0x1] }
  0x6f   : > { %v262_v30 = vrot.slane %v261_v28, 2  ;;  %v298_v38 = vadd.f32 %v297_v34, %v296_v31 }
  0x71   : > { %v263_v33 = vadd.f32 %v262_v30, %v261_v28  ;;  %v299_v40 = vrot.slane %v298_v38, 2 }
  0x73   : > { %v264_v35 = vrot.slane %v263_v33, 1  ;;  %v300_v45 = vadd.f32 %v299_v40, %v298_v38 }
  0x75   : > { %v265_v39 = vadd.f32 %v264_v35, %v263_v33  ;;  %v301_v48 = vrot.slane %v300_v45, 1 }
  0x77   : > { %v308_v43 = vmul.f32 %v576_v36, %v265_v39  ;;  %v309_v44 = vmul.f32 2.0, %v265_v39  ;;  %v302_v50 = vadd.f32 %v301_v48, %v300_v45 }
  0x79   : > { %v311_v46 = vmul.f32 %v310_v41, %v308_v43  ;;  %v331_v58 = vsub.f32 0.0, %v308_v43 }
  0x7b   : > { %v312_v49 = vsub.f32 %v309_v44, %v311_v46 }
  0x7d   : > { %v313_v51 = vmul.f32 %v312_v49, %v308_v43 }
  0x7f   : > { %v314_v53 = vsub.f32 %v302_v50, %v313_v51 }
  0x81   : > { %v315_v54 = vmul.f32 %v576_v36, %v314_v53 }
  0x83   : > { %v316_v55 = vmax.f32 %v315_v54, 0.0 }
  0x85   : > { %v317_v56 = vadd.f32 1e-08, %v316_v55 }
  0x87   : > { %577 = vrsqrt.f32 %v317_v56 }
  0x91   : > { %v578_v5 = vpop.eup %577 }
  0x92   : > { %v327_v6 = vmul.f32 %v578_v5, %v319_v59  ;;  %v332_v9 = vmul.f32 %v578_v5, %v331_v58  ;;  %v328_v2 = vmul.f32 %v578_v5, %v320_v60  ;;  %v329_v13 = vmul.f32 %v578_v5, %v321_v61 }
  0x93   : > { %v330_v17 = vmul.f32 %v578_v5, %v322_v0 }
  0x94   : > { %v333_v19 = vmul.f32 %v332_v9, %v319_v59  ;;  %v344_v3 = vrot.slane %v327_v6, %v1033_v63  ;;  %v334_v20 = vmul.f32 %v332_v9, %v320_v60  ;;  %v348_v21 = vrot.slane %v328_v2, %v1033_v63 }
  0x95   : > { %v335_v24 = vmul.f32 %v332_v9, %v321_v61  ;;  %v352_v4 = vrot.slane %v329_v13, %v1033_v63  ;;  %v336_v8 = vmul.f32 %v332_v9, %v322_v0  ;;  %v356_v25 = vrot.slane %v330_v17, %v1033_v63 }
  0x96   : > { %v337_v26 = vadd.f32 %v333_v19, %v323_v16  ;;  %v357_v28 = vmul.f32 %v344_v3, %v881_v10  ;;  %v358_v29 = vmul.f32 %v344_v3, %v886_v11  ;;  %v359_v30 = vmul.f32 %v344_v3, %v891_v12 }
  0x97   : > { %v360_v31 = vmul.f32 %v344_v3, %v899_v15  ;;  %v338_v33 = vadd.f32 %v334_v20, %v324_v1  ;;  %v361_v34 = vmul.f32 %v348_v21, %v906_v18  ;;  %v362_v35 = vmul.f32 %v348_v21, %v917_v23  ;;  %v326_v18 = vld [vmem:[%s1148_s3 + $0x3] sm:$0x1] }
  0x98   : > { %v376_v36 = vrot.slane %v337_v26, %v1033_v63  ;;  %v363_v38 = vmul.f32 %v348_v21, %v926_v27  ;;  %v364_v39 = vmul.f32 %v348_v21, %v935_v32  ;;  %v339_v40 = vadd.f32 %v335_v24, %v325_v22 }
  0x99   : > { %v380_v10 = vrot.slane %v338_v33, %v1033_v63  ;;  %v365_v11 = vmul.f32 %v352_v4, %v944_v37  ;;  %v366_v12 = vmul.f32 %v352_v4, %v953_v42  ;;  %v367_v15 = vmul.f32 %v352_v4, %v962_v47 }
  0x9a   : > { %v389_v23 = vadd.f32 %v376_v36, %v357_v28  ;;  %v390_v41 = vadd.f32 %v376_v36, %v358_v29  ;;  %v391_v43 = vadd.f32 %v376_v36, %v359_v30  ;;  %v392_v27 = vadd.f32 %v376_v36, %v360_v31 }
  0x9b   : > { %v393_v44 = vadd.f32 %v380_v10, %v361_v34  ;;  %v394_v45 = vadd.f32 %v380_v10, %v362_v35  ;;  %v395_v32 = vadd.f32 %v380_v10, %v363_v38  ;;  %v396_v46 = vadd.f32 %v380_v10, %v364_v39 }
  0x9c   : > { %405 = vst [vmem:[%s1069_s21] sm:$0xff] %v389_v23  ;;  %406 = vst [vmem:[%s1069_s21 + $0x8] sm:$0xff] %v390_v41  ;;  %v384_v37 = vrot.slane %v339_v40, %v1033_v63  ;;  %v368_v42 = vmul.f32 %v352_v4, %v971_v52  ;;  %v340_v47 = vadd.f32 %v336_v8, %v326_v18 }
  0x9d   : > { %407 = vst [vmem:[%s1069_s21 + $0x10] sm:$0xff] %v391_v43  ;;  %408 = vst [vmem:[%s1069_s21 + $0x18] sm:$0xff] %v392_v27  ;;  %v369_v48 = vmul.f32 %v356_v25, %v981_v57  ;;  %v370_v49 = vmul.f32 %v356_v25, %v990_v62  ;;  %v371_v50 = vmul.f32 %v356_v25, %v1001_v7 }
  0x9e   : > { %409 = vst [vmem:[%s1069_s21 + $0x20] sm:$0xff] %v393_v44  ;;  %410 = vst [vmem:[%s1069_s21 + $0x28] sm:$0xff] %v394_v45  ;;  %v372_v51 = vmul.f32 %v356_v25, %v1009_v14  ;;  %v397_v52 = vadd.f32 %v384_v37, %v365_v11  ;;  %v398_v53 = vadd.f32 %v384_v37, %v366_v12 }
  0x9f   : > { %411 = vst [vmem:[%s1069_s21 + $0x30] sm:$0xff] %v395_v32  ;;  %412 = vst [vmem:[%s1069_s21 + $0x38] sm:$0xff] %v396_v46  ;;  %v399_v54 = vadd.f32 %v384_v37, %v367_v15  ;;  %v400_v55 = vadd.f32 %v384_v37, %v368_v42  ;;  %v388_v56 = vrot.slane %v340_v47, %v1033_v63 }
  0xa0   : > { %413 = vst [vmem:[%s1069_s21 + $0x40] sm:$0xff] %v397_v52  ;;  %414 = vst [vmem:[%s1069_s21 + $0x48] sm:$0xff] %v398_v53 }
  0xa1   : > { %415 = vst [vmem:[%s1069_s21 + $0x50] sm:$0xff] %v399_v54  ;;  %416 = vst [vmem:[%s1069_s21 + $0x58] sm:$0xff] %v400_v55  ;;  %v401_v57 = vadd.f32 %v388_v56, %v369_v48  ;;  %v402_v62 = vadd.f32 %v388_v56, %v370_v49  ;;  %v403_v7 = vadd.f32 %v388_v56, %v371_v50 }
  0xa2   : > { %v404_v14 = vadd.f32 %v388_v56, %v372_v51 }
  0xa3   : > { %417 = vst [vmem:[%s1069_s21 + $0x60] sm:$0xff] %v401_v57  ;;  %418 = vst [vmem:[%s1069_s21 + $0x68] sm:$0xff] %v402_v62 }
  0xa4   : > { %419 = vst [vmem:[%s1069_s21 + $0x70] sm:$0xff] %v403_v7  ;;  %420 = vst [vmem:[%s1069_s21 + $0x78] sm:$0xff] %v404_v14 }
  0xa5   : > { %632 = shalt.err (!%p629_p5)
}
  0xa6   : > { %s633_s16 = scalar_lea.hbm %s1095_s0, 2048  ;;  %s637_s17 = scalar_lea.hbm %s1149_s4, 4096 }
  0xa7   : > { %p634_p7 = scmp.ne.s32.totalorder %s1095_s0, %s633_s16  ;;  %p638_p12 = scmp.lt.u32.totalorder %s1095_s0, %s1149_s4 }
  0xa8   : > { %p639_p4 = scmp.lt.u32.totalorder %s637_s17, %s633_s16  ;;  %p641_p9 = scmp.lt.u32.totalorder %s633_s16, %s1095_s0 }
  0xa9   : > { %p635_p8 = pnand %p634_p7, %p1156_p0 }
  0xaa   : > { %p640_p6 = por %p639_p4, %p638_p12 }
  0xab   : > { %p636_p10 = pneg %p635_p8 }
  0xac   : > { %p642_p1 = por %p641_p9, %p640_p6 }
  0xae   : > { %p643_p2 = pnand %p642_p1, %p636_p10 }
  0xb0   : > { %646 = shalt.err (!%p643_p2)
}
  0xb1   : > { %s694_s20 = smov 128   ;;  %s695_s21 = smov 8  }
  0xb2   : > { %526 = dma.vmem_to_hbm [thread:$0]  (%p1156_p0), %s1097_s29, 2048, %s1095_s0, %s422_s8, %s694_s20, %s694_s20, %s695_s21  }
  0xb3 PF: > { %s450_s22 = sand.u32 1, %s675_s25   ;;  %p1157_p11 = scmp.ne.s32.totalorder %s1154_s11, 0 }
  0xb4   : > { %p1158_p13 = scmp.ge.s32.totalorder %s687_s28, 2  ;;  %s451_s5 = scalar_lea.sflag [#allocation6], %s450_s22 }
  0xb6   : > { %p533_p3 = pnand %p1158_p13, %p1157_p11 }
  0xb8   : > { %670 = dma.done.wait (!%p533_p3), %s451_s5, 2048  }
  0xb9   : > { %672 = vsyncadd (!%p533_p3), %s451_s5, 4294965248  ;;  %p21_p5 = scmp.ge.s32.totalorder %s758_s30, 4   ;;  %s1159_s25 = smov %s679_s26 }
  0xba   : > { %s1160_s26 = smov %s683_s27  ;;  %s1161_s27 = smov %s770_s7 }
  0xbb   : > { %s1162_s28 = smov %s758_s30  ;;  %23 = sbr.rel (!%p21_p5) target bundleno = 17 (0x11), region = 77 }
  0xc2   :  { %456 = vsyncpa [#allocation5], 1 }
  0xc3   :  { %458 = vsyncpa [#allocation5 + $0x1], 1 }
  0xc4   :  { %459 = vsyncpa [#allocation6], 1 }
  0xc5   :  { %461 = vsyncpa [#allocation6 + $0x1], 1 }

</bundles_post_ra>
